<compile_context>
chip_gen: v7x
topology: tpu7x:2x2x1
jax: 0.10.0
libtpu: 0.0.40
codegen_flags: <defaults>
</compile_context>

<pallas_src>
import jax
import jax.numpy as jnp
import numpy as np
from jax.experimental import pallas as pl
from jax.experimental.pallas import tpu as pltpu


# --------------------------------------------------------------------------
# Fused kernel: (ScalarMix + segment-mean pooling) as one matmul -> projection
#   grid = (B, P // block_p);  B parallel, packed axis is a reduction.
# --------------------------------------------------------------------------
def _fused_kernel(h_ref, desc_ref, lane_ref, wproj_ref, out_ref, pooled_acc):
    p_idx = pl.program_id(1)
    n_layers, _, block_p, H = h_ref.shape
    K = n_layers * block_p

    # per-word packed-segment descriptor: [start, end, 1/count, 0]
    desc = desc_ref[0]                      # (L, 4) f32
    start = desc[:, 0:1]                    # (L, 1)
    end = desc[:, 1:2]                      # (L, 1)
    inv = desc[:, 2:3]                      # (L, 1)

    # lane table (constant across grid): row 0 = position within tile per
    # flattened (layer, k) column, row 1 = ScalarMix weight of that column.
    pos = lane_ref[0:1, :] + (p_idx * block_p).astype(jnp.float32)   # (1, K)
    w_lane = lane_ref[1:2, :]                                        # (1, K)

    # selection matrix folding layer weight + 1/count + in-segment mask
    sel = (pos >= start) & (pos < end)                               # (L, K)
    seg = jnp.where(sel, inv * w_lane, 0.0).astype(jnp.bfloat16)     # (L, K)

    # single MXU matmul replaces scalar-mix RMW + scatter-back + mean-pool
    h = h_ref[...].reshape(K, H)                                     # bf16
    partial = jnp.dot(seg, h, preferred_element_type=jnp.float32)    # (L, H)

    @pl.when(p_idx == 0)
    def _():
        pooled_acc[...] = partial

    @pl.when(p_idx > 0)
    def _():
        pooled_acc[...] += partial

    # projection + single lane-dense store on the last packed tile
    @pl.when(p_idx == pl.num_programs(1) - 1)
    def _():
        out_ref[0] = jnp.dot(pooled_acc[...], wproj_ref[...],
                             preferred_element_type=jnp.float32
                             ).astype(out_ref.dtype)


def _vmem_capacity():
    try:
        return int(pltpu.get_tpu_info().vmem_capacity_bytes)
    except Exception:
        return 64 * 1024 * 1024      # conservative (v7x-sized) fallback


def _pick_block_p(P, H, n_layers, hidden_bytes=2):
    """Largest multiple-of-16 tile whose double-buffered bf16 hidden slice
    fits the generation-aware budget (v5e/v6e 128 MiB VMEM vs v7x 64 MiB)."""
    cap = _vmem_capacity()
    budget = 40 * 2**20 if cap >= 96 * 2**20 else 20 * 2**20
    p_cap = -(-P // 16) * 16
    for cand in (1024, 512, 256, 128, 64, 32, 16):
        if cand <= p_cap and 2 * n_layers * cand * H * hidden_bytes <= budget:
            return cand
    return 16


def fused_mix_pool_project(hidden, desc, lane_tbl, proj_wt_pad, *, block_p):
    n_layers, B, P, H = hidden.shape
    L = desc.shape[1]
    n_out_pad = proj_wt_pad.shape[1]
    assert P % block_p == 0 and block_p % 16 == 0
    n_ptiles = P // block_p
    K = n_layers * block_p

    # rough scoped-VMEM estimate (double-buffered inputs/outputs + scratch +
    # in-kernel temporaries), with margin; capped per generation.
    est = (2 * n_layers * block_p * H * hidden.dtype.itemsize   # hidden x2
           + 2 * H * n_out_pad * 4                              # W^T padded
           + 2 * L * n_out_pad * 4                              # output tile
           + 2 * max(L, 8) * 128 * 4                            # descriptor
           + 2 * 8 * max(K, 128) * 4                            # lane table
           + L * H * 4                                          # pooled scratch
           + L * K * 6                                          # seg (f32+bf16)
           + K * H * hidden.dtype.itemsize                      # h reshape
           + 2 * L * H * 4)                                     # partial etc.
    cap = _vmem_capacity()
    hard_cap = (100 * 2**20 if cap >= 96 * 2**20
                else min(56 * 2**20, int(0.85 * cap)))
    vmem_limit = int(min(hard_cap, max(2 * est, 32 * 2**20)))

    return pl.pallas_call(
        _fused_kernel,
        out_shape=jax.ShapeDtypeStruct((B, L, n_out_pad), jnp.float32),
        grid=(B, n_ptiles),
        in_specs=[
            pl.BlockSpec((n_layers, 1, block_p, H),
                         lambda b, p: (0, b, p, 0)),             # hidden tile
            pl.BlockSpec((1, L, 4), lambda b, p: (b, 0, 0)),     # descriptors
            pl.BlockSpec((2, K), lambda b, p: (0, 0)),           # lane table
            pl.BlockSpec((H, n_out_pad), lambda b, p: (0, 0)),   # W^T padded
        ],
        out_specs=pl.BlockSpec((1, L, n_out_pad), lambda b, p: (b, 0, 0)),
        scratch_shapes=[
            pltpu.VMEM((L, H), jnp.float32),     # pooled accumulator
        ],
        compiler_params=pltpu.CompilerParams(
            dimension_semantics=("parallel", "arbitrary"),
            vmem_limit_bytes=vmem_limit),
    )(hidden, desc, lane_tbl, proj_wt_pad)


# --------------------------------------------------------------------------
# Module wrapper (parameter setup + pack/unpack glue in plain JAX)
# --------------------------------------------------------------------------
class BertEmbeddingPallas:
    def __init__(self, key, *, vocab_size, n_layers, hidden_size, n_out,
                 max_positions, pad_index=0):
        self.vocab_size = vocab_size
        self.n_layers = n_layers
        self.hidden_size = hidden_size
        self.n_out = n_out
        self.pad_index = pad_index

        k1, k2, k3, k4 = jax.random.split(key, 4)
        # synthetic per-layer "BERT hidden state" tables (deterministic)
        self.tok_emb = 0.02 * jax.random.normal(
            k1, (n_layers, vocab_size, hidden_size), jnp.float32)
        self.pos_emb = 0.02 * jax.random.normal(
            k2, (n_layers, max_positions, hidden_size), jnp.float32)
        # ScalarMix parameters (weights + gamma)
        self.mix_raw_weights = 0.1 * jax.random.normal(k3, (n_layers,),
                                                       jnp.float32)
        self.gamma = jnp.float32(1.0)
        # projection (nn.Linear(hidden, n_out, bias=False)), hidden != n_out
        self.proj_w = (jax.random.normal(k4, (n_out, hidden_size), jnp.float32)
                       / np.sqrt(hidden_size)).astype(jnp.float32)
        # pre-transposed + lane-dense-padded copy for the kernel
        self.n_out_pad = ((n_out + 127) // 128) * 128
        self.proj_wt_pad = jnp.zeros((hidden_size, self.n_out_pad),
                                     jnp.float32).at[:, :n_out].set(
                                         self.proj_w.T)

    def forward(self, subwords, use_pallas=True, block_p=None):
        B, L, F = subwords.shape
        P_raw = L * F
        mask = subwords != self.pad_index                     # (B, L, F)
        flat_ids = subwords.reshape(B, P_raw)
        flat_mask = mask.reshape(B, P_raw)

        # emulate pad_sequence(subwords[mask].split(lens), True) with fixed
        # max packed length: stable-sort kept subwords to the front.
        order = jnp.argsort(~flat_mask, axis=1, stable=True)            # (B, P)
        packed_ids = jnp.take_along_axis(flat_ids, order, axis=1)       # (B, P)
        bert_mask = jnp.take_along_axis(flat_mask, order, axis=1)       # (B, P)
        packed_ids = jnp.where(bert_mask, packed_ids, 0)

        # synthetic BERT: per-layer hidden states over the packed sequence,
        # streamed to the kernel in bf16 (accumulation stays f32).
        tok = self.tok_emb[:, packed_ids]                               # (nL,B,P,H)
        pos = self.pos_emb[:, None, :P_raw, :]                          # (nL,1,P,H)
        hidden = ((tok + pos) * bert_mask[None, :, :, None].astype(jnp.float32)
                  ).astype(jnp.bfloat16)

        # ScalarMix weights: gamma * softmax(w)
        mix_w = (self.gamma * jax.nn.softmax(self.mix_raw_weights)
                 ).astype(jnp.float32)

        # per-word packed-segment descriptors (kept-first packing => word l's
        # subwords occupy packed positions [start_l, start_l + count_l))
        counts = mask.sum(-1).astype(jnp.int32)                          # (B, L)
        starts = (jnp.cumsum(counts, axis=1) - counts).astype(jnp.int32)
        inv_counts = 1.0 / jnp.maximum(counts, 1).astype(jnp.float32)

        if use_pallas:
            if block_p is None:
                block_p = _pick_block_p(P_raw, self.hidden_size, self.n_layers)
            assert block_p % 16 == 0, "bf16 hidden needs block_p % 16 == 0"
            P = -(-P_raw // block_p) * block_p          # pad packed axis
            hidden_k = hidden
            if P > P_raw:
                hidden_k = jnp.pad(hidden,
                                   ((0, 0), (0, 0), (0, P - P_raw), (0, 0)))

            # one lane-dense descriptor per word: [start, end, 1/count, 0]
            desc = jnp.stack([starts.astype(jnp.float32),
                              (starts + counts).astype(jnp.float32),
                              inv_counts,
                              jnp.zeros_like(inv_counts)], axis=-1)     # (B,L,4)
            # constant lane table: within-tile position + layer mix weight
            pos_lane = jnp.tile(jnp.arange(block_p, dtype=jnp.float32),
                                self.n_layers)
            w_lane = jnp.repeat(mix_w, block_p)
            lane_tbl = jnp.stack([pos_lane, w_lane], axis=0)            # (2, K)

            out = fused_mix_pool_project(hidden_k, desc, lane_tbl,
                                         self.proj_wt_pad, block_p=block_p)
            embed = out[..., : self.n_out]
        else:
            # pure-JAX reference of the same forward (same bf16 hidden input)
            bert = jnp.einsum('l,lbph->bph', mix_w, hidden.astype(jnp.float32))
            rank = jnp.clip(jnp.cumsum(flat_mask, axis=1) - 1, 0, P_raw - 1)
            sub = jnp.take_along_axis(bert, rank[:, :, None], axis=1)
            sub = sub * flat_mask[:, :, None].astype(jnp.float32)
            sub = sub.reshape(B, L, F, self.hidden_size)
            bert_lens = jnp.maximum(mask.sum(-1), 1
                                    ).astype(jnp.float32)[..., None]
            pooled = sub.sum(2) / bert_lens
            embed = pooled @ self.proj_w.T

        # n_attentions == 0 -> seq_attn is None (attention branch not exercised)
        return embed, None


# --------------------------------------------------------------------------
if __name__ == "__main__":
    B, L, F = 2, 8, 4           # batch, seq_len, fix_len
    H, N_OUT = 32, 16           # hidden_size, projected n_out
    N_LAYERS = 4
    VOCAB = 64
    PAD = 0

    key = jax.random.PRNGKey(0)
    k_mod, k_ids, k_pad = jax.random.split(key, 3)

    module = BertEmbeddingPallas(
        k_mod, vocab_size=VOCAB, n_layers=N_LAYERS, hidden_size=H,
        n_out=N_OUT, max_positions=L * F, pad_index=PAD)

    # deterministic example subword ids with some [PAD] entries
    ids = jax.random.randint(k_ids, (B, L, F), 1, VOCAB, dtype=jnp.int32)
    pad_mask = jax.random.bernoulli(k_pad, 0.3, (B, L, F))
    subwords = jnp.where(pad_mask, PAD, ids).astype(jnp.int32)

    # block_p=16 (< P=32) so the demo exercises the packed-axis accumulation
    embed, seq_attn = module.forward(subwords, use_pallas=True, block_p=16)
    embed = jax.block_until_ready(embed)

    # sanity check vs. pure-JAX reference of the same forward (bf16 hidden ->
    # slightly looser tolerance than the old f32 path)
    ref_embed, _ = module.forward(subwords, use_pallas=False)
    ref_embed = jax.block_until_ready(ref_embed)
    assert embed.shape == (B, L, N_OUT)
    assert seq_attn is None
    np.testing.assert_allclose(np.asarray(embed), np.asarray(ref_embed),
                               rtol=3e-2, atol=2e-3)

    print("KERNEL_OK")
</pallas_src>

<mosaic_0001>
module attributes {stable_mosaic.version = 11 : i64} {
  func.func @_fused_kernel(%arg0: i32, %arg1: i32, %arg2: memref<4x1x16x32xbf16, #tpu.memory_space<vmem>>, %arg3: memref<1x8x4xf32, #tpu.memory_space<vmem>>, %arg4: memref<2x64xf32, #tpu.memory_space<vmem>>, %arg5: memref<32x128xf32, #tpu.memory_space<vmem>>, %arg6: memref<1x8x128xf32, #tpu.memory_space<vmem>>, %arg7: memref<8x32xf32, #tpu.memory_space<vmem>>) attributes {dimension_semantics = [#tpu.dimension_semantics<parallel>, #tpu.dimension_semantics<arbitrary>], iteration_bounds = array<i64: 2, 2>, scalar_prefetch = 0 : i64, scratch_operands = 1 : i64, tpu.core_type = #tpu.core_type<tc>, window_params = [{transform_indices = @transform_0, window_bounds = array<i64: 4, 1, 16, 32>}, {transform_indices = @transform_1, window_bounds = array<i64: 1, 8, 4>}, {pipeline_mode = #tpu.pipeline_mode<synchronous>, transform_indices = @transform_2, window_bounds = array<i64: 2, 64>}, {pipeline_mode = #tpu.pipeline_mode<synchronous>, transform_indices = @transform_3, window_bounds = array<i64: 32, 128>}, {transform_indices = @transform_4, window_bounds = array<i64: 1, 8, 128>}]} {
    %c0 = arith.constant 0 : index
    %c0_0 = arith.constant 0 : index
    %c0_1 = arith.constant 0 : index
    %0 = vector.load %arg3[%c0, %c0_0, %c0_1] : memref<1x8x4xf32, #tpu.memory_space<vmem>>, vector<1x8x4xf32>
    %1 = vector.shape_cast %0 : vector<1x8x4xf32> to vector<8x4xf32>
    %2 = vector.extract_strided_slice %1 {offsets = [0, 0], sizes = [8, 1], strides = [1, 1]} : vector<8x4xf32> to vector<8x1xf32>
    %3 = vector.extract_strided_slice %1 {offsets = [0, 1], sizes = [8, 1], strides = [1, 1]} : vector<8x4xf32> to vector<8x1xf32>
    %4 = vector.extract_strided_slice %1 {offsets = [0, 2], sizes = [8, 1], strides = [1, 1]} : vector<8x4xf32> to vector<8x1xf32>
    %c0_2 = arith.constant 0 : index
    %c0_3 = arith.constant 0 : index
    %5 = vector.load %arg4[%c0_2, %c0_3] : memref<2x64xf32, #tpu.memory_space<vmem>>, vector<1x64xf32>
    %c16_i32 = arith.constant 16 : i32
    %6 = arith.muli %arg1, %c16_i32 : i32
    %7 = arith.sitofp %6 : i32 to f32
    %8 = vector.broadcast %7 : f32 to vector<1x64xf32>
    %9 = arith.addf %5, %8 : vector<1x64xf32>
    %c1 = arith.constant 1 : index
    %c0_4 = arith.constant 0 : index
    %10 = vector.load %arg4[%c1, %c0_4] : memref<2x64xf32, #tpu.memory_space<vmem>>, vector<1x64xf32>
    %11 = vector.broadcast %9 : vector<1x64xf32> to vector<8x64xf32>
    %12 = vector.broadcast %2 : vector<8x1xf32> to vector<8x64xf32>
    %13 = arith.cmpf oge, %11, %12 : vector<8x64xf32>
    %14 = vector.broadcast %9 : vector<1x64xf32> to vector<8x64xf32>
    %15 = vector.broadcast %3 : vector<8x1xf32> to vector<8x64xf32>
    %16 = arith.cmpf olt, %14, %15 : vector<8x64xf32>
    %17 = arith.andi %13, %16 : vector<8x64xi1>
    %18 = vector.broadcast %4 : vector<8x1xf32> to vector<8x64xf32>
    %19 = vector.broadcast %10 : vector<1x64xf32> to vector<8x64xf32>
    %20 = arith.mulf %18, %19 : vector<8x64xf32>
    %cst = arith.constant 0.000000e+00 : f32
    %21 = vector.broadcast %cst : f32 to vector<8x64xf32>
    %22 = arith.select %17, %20, %21 : vector<8x64xi1>, vector<8x64xf32>
    %23 = arith.truncf %22 : vector<8x64xf32> to vector<8x64xbf16>
    %c0_5 = arith.constant 0 : index
    %c0_6 = arith.constant 0 : index
    %c0_7 = arith.constant 0 : index
    %c0_8 = arith.constant 0 : index
    %24 = vector.load %arg2[%c0_5, %c0_6, %c0_7, %c0_8] : memref<4x1x16x32xbf16, #tpu.memory_space<vmem>>, vector<4x1x16x32xbf16>
    %25 = vector.shape_cast %24 : vector<4x1x16x32xbf16> to vector<64x32xbf16>
    %cst_9 = arith.constant dense<0.000000e+00> : vector<8x32xf32>
    %26 = tpu.matmul %23, %25, %cst_9 {dimension_numbers = #tpu.dot_dimension_numbers<[1], [0], [0], [1], [0, 0, 1, 1], [], []>} : vector<8x64xbf16>, vector<64x32xbf16>, vector<8x32xf32> -> vector<8x32xf32>
    %c0_i32 = arith.constant 0 : i32
    %27 = arith.cmpi eq, %arg1, %c0_i32 : i32
    %28 = arith.extui %27 : i1 to i32
    %c0_i32_10 = arith.constant 0 : i32
    %29 = arith.cmpi ne, %28, %c0_i32_10 : i32
    scf.if %29 {
      %c0_14 = arith.constant 0 : index
      %c0_15 = arith.constant 0 : index
      %36 = vector.load %arg7[%c0_14, %c0_15] : memref<8x32xf32, #tpu.memory_space<vmem>>, vector<8x32xf32>
      tpu.vector_store %arg7[%c0_14, %c0_15], %26 {strides = array<i32>} : memref<8x32xf32, #tpu.memory_space<vmem>>, vector<8x32xf32>,
    } else {
    }
    %c0_i32_11 = arith.constant 0 : i32
    %30 = arith.cmpi sgt, %arg1, %c0_i32_11 : i32
    %31 = arith.extui %30 : i1 to i32
    %c0_i32_12 = arith.constant 0 : i32
    %32 = arith.cmpi ne, %31, %c0_i32_12 : i32
    scf.if %32 {
      %c0_14 = arith.constant 0 : index
      %c0_15 = arith.constant 0 : index
      %36 = vector.load %arg7[%c0_14, %c0_15] : memref<8x32xf32, #tpu.memory_space<vmem>>, vector<8x32xf32>
      %37 = arith.addf %36, %26 : vector<8x32xf32>
      %c0_16 = arith.constant 0 : index
      %c0_17 = arith.constant 0 : index
      %38 = vector.load %arg7[%c0_16, %c0_17] : memref<8x32xf32, #tpu.memory_space<vmem>>, vector<8x32xf32>
      tpu.vector_store %arg7[%c0_16, %c0_17], %37 {strides = array<i32>} : memref<8x32xf32, #tpu.memory_space<vmem>>, vector<8x32xf32>,
    } else {
    }
    %c1_i32 = arith.constant 1 : i32
    %33 = arith.cmpi eq, %arg1, %c1_i32 : i32
    %34 = arith.extui %33 : i1 to i32
    %c0_i32_13 = arith.constant 0 : i32
    %35 = arith.cmpi ne, %34, %c0_i32_13 : i32
    scf.if %35 {
      %c0_14 = arith.constant 0 : index
      %c0_15 = arith.constant 0 : index
      %36 = vector.load %arg7[%c0_14, %c0_15] : memref<8x32xf32, #tpu.memory_space<vmem>>, vector<8x32xf32>
      %c0_16 = arith.constant 0 : index
      %c0_17 = arith.constant 0 : index
      %37 = vector.load %arg5[%c0_16, %c0_17] : memref<32x128xf32, #tpu.memory_space<vmem>>, vector<32x128xf32>
      %cst_18 = arith.constant dense<0.000000e+00> : vector<8x128xf32>
      %38 = tpu.matmul %36, %37, %cst_18 {dimension_numbers = #tpu.dot_dimension_numbers<[1], [0], [0], [1], [0, 0, 1, 1], [], []>} : vector<8x32xf32>, vector<32x128xf32>, vector<8x128xf32> -> vector<8x128xf32>
      %c0_19 = arith.constant 0 : index
      %c0_20 = arith.constant 0 : index
      %c0_21 = arith.constant 0 : index
      %39 = vector.load %arg6[%c0_19, %c0_20, %c0_21] : memref<1x8x128xf32, #tpu.memory_space<vmem>>, vector<1x8x128xf32>
      %40 = vector.shape_cast %39 : vector<1x8x128xf32> to vector<8x128xf32>
      %41 = vector.shape_cast %38 : vector<8x128xf32> to vector<1x8x128xf32>
      tpu.vector_store %arg6[%c0_19, %c0_20, %c0_21], %41 {strides = array<i32>} : memref<1x8x128xf32, #tpu.memory_space<vmem>>, vector<1x8x128xf32>,
    } else {
    }
    return
  }
  func.func @transform_0(%arg0: i32, %arg1: i32) -> (i32, i32, i32, i32) {
    %c0_i32 = arith.constant 0 : i32
    %c0_i32_0 = arith.constant 0 : i32
    %c0_i32_1 = arith.constant 0 : i32
    return %c0_i32, %arg0, %arg1, %c0_i32_0 : i32, i32, i32, i32
  }
  func.func @transform_1(%arg0: i32, %arg1: i32) -> (i32, i32, i32) {
    %c0_i32 = arith.constant 0 : i32
    %c0_i32_0 = arith.constant 0 : i32
    %c0_i32_1 = arith.constant 0 : i32
    return %arg0, %c0_i32, %c0_i32_0 : i32, i32, i32
  }
  func.func @transform_2(%arg0: i32, %arg1: i32) -> (i32, i32) {
    %c0_i32 = arith.constant 0 : i32
    %c0_i32_0 = arith.constant 0 : i32
    %c0_i32_1 = arith.constant 0 : i32
    return %c0_i32, %c0_i32_0 : i32, i32
  }
  func.func @transform_3(%arg0: i32, %arg1: i32) -> (i32, i32) {
    %c0_i32 = arith.constant 0 : i32
    %c0_i32_0 = arith.constant 0 : i32
    %c0_i32_1 = arith.constant 0 : i32
    return %c0_i32, %c0_i32_0 : i32, i32
  }
  func.func @transform_4(%arg0: i32, %arg1: i32) -> (i32, i32, i32) {
    %c0_i32 = arith.constant 0 : i32
    %c0_i32_0 = arith.constant 0 : i32
    %c0_i32_1 = arith.constant 0 : i32
    return %arg0, %c0_i32, %c0_i32_0 : i32, i32, i32
  }
}

</mosaic_0001>

<bundles_post_ra>
// kernel: tpu_custom_call.1
= control target key start
LH: loop header
LB: loop body
LE: loop exit
PB: predicated region body
PF: predicated region fallthrough
CT: control target
= control target key end

     0   :  { %9 = vsyncpa [#allocation4], 0  ;;  %s1185_s0 = inlined_call_operand.hbm [shape: bf16[4,2,32,32], index: 0, kind: input, shape index: {}]   ;;  %s1186_s1 = inlined_call_operand.vmem [shape: f32[2,8,4], index: 1, kind: input, shape index: {}]   ;;  %s1187_s2 = inlined_call_operand.vmem [shape: f32[2,64], index: 2, kind: input, shape index: {}]   ;;  %s1188_s3 = inlined_call_operand.vmem [shape: f32[32,128], index: 3, kind: input, shape index: {}]   ;;  %s1189_s4 = inlined_call_operand.hbm [shape: f32[2,8,128], index: 4, kind: output, shape index: {}]  }
   0x1   :  { %11 = vsyncpa [#allocation4 + $0x1], 0 }
   0x2   :  { %12 = vsyncpa [#allocation5], 0 }
   0x3   :  { %14 = vsyncpa [#allocation5 + $0x1], 0  ;;  %s952_s15 = smov 0   ;;  %s954_s16 = smov 0  }
   0x4   :  { %s956_s17 = smov 0   ;;  %s958_s18 = smov 0  }
   0x5   :  { %s960_s19 = smov 0   ;;  %s962_s20 = smov 0  }
   0x6   :  { %s964_s21 = smov 0   ;;  %s966_s22 = smov 0  }
   0x7   :  { %s968_s23 = smov 0   ;;  %s970_s24 = smov 0  }
   0x8   :  { %s972_s25 = smov 0  }
   0x9 LB: > { %1194 = sst [smem:[#allocation12_spill]] %s902_s23  ;;  %s594_s26 = sadd.s32 4294967295, %s910_s25   ;;  %s910_s25 = sphi %s972_s25, %s20_s25   ;;  %s906_s24 = sphi %s970_s24, %s1209_s24   ;;  %s902_s23 = sphi %s968_s23, %s1208_s23   ;;  %s898_s22 = sphi %s966_s22, %s1207_s22   ;;  %s894_s21 = sphi %s964_s21, %s1216_s21   ;;  %s890_s20 = sphi %s962_s20, %s1215_s20   ;;  %s886_s19 = sphi %s960_s19, %s1214_s19   ;;  %s882_s18 = sphi %s958_s18, %s1213_s18   ;;  %s878_s17 = sphi %s956_s17, %s1212_s17   ;;  %s874_s16 = sphi %s954_s16, %s1211_s16   ;;  %s870_s15 = sphi %s952_s15, %s1210_s15  }
   0xa   : > { %1195 = sst [smem:[#allocation13_spill]] %s906_s24  ;;  %s595_s27 = sadd.s32 4294967294, %s910_s25  }
   0xb   : > { %s29_s28 = sadd.s32 1, %s902_s23  ;;  %s32_s29 = sadd.s32 1, %s906_s24 }
   0xc   : > { %p30_p0 = scmp.ge.s32.totalorder %s29_s28, 2  ;;  %s41_s30 = sadd.s32 1, %s890_s20 }
   0xd   : > { %p48_p1 = scmp.ne.s32.totalorder %s890_s20, %s886_s19  ;;  %p49_p2 = scmp.eq.s32.totalorder %s910_s25, 0 }
   0xe   : > { %s1218_s28 = smov (%p30_p0, %s29_s28), 0  ;;  %s1220_s29 = smov (!%p30_p0, %s32_s29), %s906_s24 }
   0xf   : > { %1196 = sst [smem:[#allocation14_spill]] %s1218_s28  ;;  %s37_s5 = ssub.s32 %s902_s23, %s1218_s28 }
  0x10   : > { %p1018_p3 = por %p49_p2, %p48_p1  ;;  %p34_p4 = scmp.ge.s32.totalorder %s1220_s29, 2 }
  0x11   : > { %p54_p5 = scmp.ne.s32.totalorder %s886_s19, %s882_s18  ;;  %p55_p6 = scmp.eq.s32.totalorder %s594_s26, 0 }
  0x12   : > { %s135_s7 = sadd.s32 1, %s878_s17  ;;  %s1222_s29 = smov (%p34_p4, %s1220_s29), 0 }
  0x13   : > { %1198 = sst [smem:[#allocation15_spill]] %s1222_s29  ;;  %p1026_p7 = por %p55_p6, %p54_p5 }
  0x14   : > { %p145_p8 = scmp.ne.s32.totalorder %s878_s17, %s874_s16  ;;  %s36_s9 = ssub.s32 %s906_s24, %s1222_s29 }
  0x15   : > { %p146_p9 = scmp.eq.s32.totalorder %s594_s26, 3  ;;  %s38_s10 = sor.u32 %s37_s5, %s36_s9 }
  0x16   : > { %p133_p10 = scmp.eq.s32.totalorder %s36_s9, 0  ;;  %p39_p11 = scmp.eq.s32.totalorder %s38_s10, 0 }
  0x17   : > { %p1034_p12 = por %p146_p9, %p145_p8  ;;  %p151_p13 = scmp.ne.s32.totalorder %s874_s16, %s870_s15 }
  0x18   : > { %s1039_s12 = scalar_select %p133_p10, %s878_s17, %s135_s7  }
  0x19   : > { %s1042_s13 = scalar_select %p39_p11, %s890_s20, %s41_s30  }
  0x1a   : > { %1201 = sst [smem:[#allocation16_spill]] %s1039_s12  ;;  %p152_p0 = scmp.eq.s32.totalorder %s595_s27, 3 }
  0x1b   : > { %1202 = sst [smem:[#allocation17_spill]] %s1042_s13  ;;  %p597_p2 = scmp.ge.s32.totalorder %s910_s25, 4 }
  0x1c   : > { %p1046_p1 = por %p152_p0, %p151_p13 }
  0x1d   : > { %174 = sbr.rel (%p597_p2) target bundleno = 52 (0x34), region = 24 }
  0x24   : > { %s178_s18 = sand.u32 1, %s890_s20   ;;  %s599_s26 = sshll.u32 %s902_s23, 1 }
  0x25   : > { %s598_s30 = sshll.u32 %s178_s18, 5  ;;  %s600_s5 = sshll.u32 %s906_s24, 2 }
  0x26   : > { %s188_s27 = sadd.s32 %s600_s5, %s599_s26  ;;  %s182_s7 = scalar_lea.vmem [#allocation3], %s598_s30 }
  0x27   : > { %s203_s9 = sshll.u32 %s182_s7, 4  ;;  %s601_s10 = sshll.u32 %s188_s27, 6  ;;  %s204_s9 = int_to_ptr.vmem [resolvable:$true] %s203_s9 }
  0x28   : > { %s662_s29 = scalar_select %p1018_p3, [#allocation0], [#allocation9] }
  0x29   : > { %s912_s28 = smov 512   ;;  %s913_s12 = smov 128  }
  0x2a   : > { %663 = sst [smem:[#allocation8]] (%p1018_p3), %s912_s28  ;;  %s914_s23 = smov 2  }
  0x2b   : > { %s195_s13 = sld [smem:[%s662_s29]]   ;;  %s915_s26 = smov 64  }
  0x2c   : > { %664 = sst [smem:[#allocation8 + $0x1]] (%p1018_p3), %s913_s12  ;;  %s190_s27 = scalar_lea.hbm %s1185_s0, %s601_s10 }
  0x2d   : > { %665 = sst [smem:[#allocation8 + $0x2]] (%p1018_p3), %s914_s23  ;;  %s916_s7 = smov 4  }
  0x2e   : > { %666 = sst [smem:[#allocation8 + $0x3]] (%p1018_p3), %s915_s26  ;;  %s179_s24 = scalar_lea.sflag [#allocation4], %s178_s18 }
  0x2f   : > { %667 = sst [smem:[#allocation8 + $0x4]] (%p1018_p3), %s915_s26  ;;  %s917_s12 = smov [#allocation7]  }
  0x30   : > { %668 = sst [smem:[#allocation8 + $0x5]] (%p1018_p3), %s916_s7 }
  0x31   : > { %s602_s28 = sshll.u32 %s195_s13, 26 }
  0x32   : > { %s603_s29 = sadd.s32 134217728, %s602_s28 }
  0x33   : > { %669 = dma.general (%p1018_p3), %s190_s27, 512, %s204_s9, %s179_s24, %s917_s12, [#allocation8], %s603_s29, 0  }
  0x34 PF: > { %p604_p4 = scmp.ge.s32.totalorder %s910_s25, 1  ;;  %p231_p5 = scmp.lt.s32.totalorder %s910_s25, 5 }
  0x36   : > { %p232_p6 = pnand %p604_p4, %p231_p5 }
  0x37   : > { %s237_s23 = sand.u32 (!%p232_p6), 1, %s886_s19  }
  0x38   : > { %235 = sbr.rel (%p232_p6) target bundleno = 681 (0x2a9), region = 36  ;;  %s605_s10 = sshll.u32 (!%p232_p6), %s237_s23, 5 }
  0x39   : > { %s238_s26 = scalar_lea.sflag (!%p232_p6), [#allocation4], %s237_s23  ;;  %s1076_s30 = scalar_lea.vmem (!%p232_p6), [#allocation3], %s605_s10 }
  0x3f   : > { %861 = dma.done.wait (%p1026_p7), %s238_s26, 512  }
  0x40   : > { %863 = vsyncadd (%p1026_p7), %s238_s26, 4294966784  ;;  %p271_p3 = scmp.lt.s32.totalorder %s898_s22, 1  ;;  %s267_s24 = sand.u32 1, %s874_s16   ;;  %v918_v0 = vmov 0   ;;  %v919_v1 = vmov 2   ;;  %v920_v2 = vmov 0.0   ;;  %v283_v9 = vlaneseq }
  0x41   : > { %780 = vset.pattern.permute.xlu0 %v918_v0  ;;  %782 = vset.pattern.permute.xlu1 %v919_v1  ;;  %s1086_s6 = sshll.u32 %s267_s24, 3  ;;  %v784_v4 = vld [vmem:[%s1076_s30] sm:$0xff]   ;;  %v785_v5 = vld [vmem:[%s1076_s30 + $0x8] sm:$0xff]   ;;  %v921_v6 = vmov 1   ;;  %v786_v7 = vld [vmem:[%s1076_s30 + $0x10] sm:$0xff]   ;;  %vm922_vm0 = vmmov 0  }
  0x42   : > { %s272_s13 = scalar_select %p271_p3, %s898_s22, 1  ;;  %633 = vmatprep.subr.bf16.mxu0 %v920_v2  ;;  %641 = vmatprep.mubr.msk.bf16.mxu0 %vm922_vm0, %v920_v2  ;;  %v787_v8 = vld [vmem:[%s1076_s30 + $0x18] sm:$0xff]   ;;  %v284_v10 = vshrl.u32 %v283_v9, 7  ;;  %vm342_vm4 = vcmask 523264  }
  0x43   : > { %634 = vmatpush3.bf16.msra.mxu0 %v784_v4  ;;  %s608_s27 = sshll.u32 %s894_s21, 4  ;;  %v277_v11 = vld [vmem:[%s1187_s2] sm:$0x1]  ;;  %v609_v16 = vld [vmem:[%s1187_s2 + $0x1] ss:$0 sm:$0xff]  ;;  %s269_s10 = scalar_lea.vmem [#allocation6], %s1086_s6 }
  0x44   : > { %s607_s8 = sshll.u32 %s272_s13, 3  ;;  %635 = vmatprep.subr.bf16.mxu0 %v920_v2  ;;  %s279_s7 = scvt.s32.f32 %s608_s27  ;;  %v285_v14 = vsub.s32 0, %v284_v10 }
  0x45   : > { %s274_s5 = scalar_lea.vmem %s1186_s1, %s607_s8  ;;  %p615_p7 = scmp.ne.s32.totalorder %s894_s21, 0 }
  0x46   : > { %v276_v3 = vld [vmem:[%s274_s5] sm:$0xff]  ;;  %v280_v12 = vstv %s279_s7  ;;  %vm390_vm5 = vcmask (!%p615_p7), 261120  }
  0x47   : > { %289 = vperm.xlu0 %780, %v276_v3   ;;  %300 = vperm.xlu1 %782, %v276_v3   ;;  %v281_v13 = vadd.f32 %v280_v12, %v277_v11 }
  0x48   : > { %636 = vmatpush3.bf16.msra.mxu0 %v785_v5 }
  0x49   : > { %637 = vmatprep.subr.bf16.mxu0 %v920_v2  ;;  %v286_v18 = vrot.slane %v281_v13, %v285_v14 }
  0x4b   : > { %781 = vset.pattern.permute.xlu0 %v921_v6 }
  0x4c   : > { %294 = vperm.xlu0 %781, %v276_v3   ;;  %638 = vmatpush3.bf16.msra.mxu0 %v786_v7 }
  0x4d   : > { %639 = vmatprep.subr.bf16.mxu0 %v920_v2 }
  0x50   : > { %783 = vset.pattern.permute.xlu0 %v919_v1  ;;  %640 = vmatpush3.bf16.msra.mxu0 %v787_v8 }
  0xc6   : > { %v290_v15 = vpop.permute.xlu0 %289  ;;  %v301_v17 = vpop.permute.xlu1 %300 }
  0xc7   : > { %v307_v19 = vmul.f32 %v609_v16, %v301_v17  ;;  %vm292_vm1 = vcmp.ge.f32.partialorder %v286_v18, %v290_v15 }
  0xcb   : > { %v295_v20 = vpop.permute.xlu0 %294 }
  0xcc   : > { %vm297_vm2 = vcmp.lt.f32.partialorder %v286_v18, %v295_v20 }
  0xcd   : > { %vm298_vm3 = vmand %vm292_vm1, %vm297_vm2 }
  0xce   : > { %v308_v21 = vsel %vm298_vm3, %v307_v19, 0.0 }
  0xcf   : > { %v309_v22 = vpack.c.bf16 %v308_v21, %v308_v21 }
  0xd1   : > { %642 = vmatmul.mubr.msk.bf16.vlgmr.msra.gmra.mrb[0].mxu0 %vm342_vm4, %v309_v22 }
 0x1a1   : > { %389 = sbr.rel (%p615_p7) target bundleno = 424 (0x1a8), region = 44 }
 0x1a4   : > { %v380_v23 = vpop.f32.mrb[0].mxu0 }
 0x1a5   : > { %v643_v24 = vpop.f32.mrb[1].mxu0  ;;  %391 = vst.msk [vmem:[#allocation2] sm:$0xff] (!%p615_p7), %vm390_vm5, %v380_v23 }
 0x1a6   : > { %v383_v25 = vpop.f32.mrb[2].mxu0 }
 0x1a7   : > { %v644_v26 = vpop.f32.mrb[3].mxu0 }
 0x1a8 PF: > { %p616_p8 = scmp.le.s32.totalorder %s894_s21, 0 }
 0x1a9   : > { %vm398_vm6 = vcmask (!%p616_p8), 261120  }
 0x1aa   : > { %395 = sbr.rel (%p616_p8) target bundleno = 433 (0x1b1), region = 48 }
 0x1ac   : > { %v396_v27 = vld [vmem:[#allocation2] sm:$0xff] (!%p616_p8) }
 0x1ad   : > { %v397_v28 = vadd.f32 (!%p616_p8), %v396_v27, %v380_v23 }
 0x1af   : > { %399 = vst.msk [vmem:[#allocation2] sm:$0xff] (!%p616_p8), %vm398_vm6, %v397_v28 }
 0x1b1 PF: > { %p617_p9 = scmp.ne.s32.totalorder %s894_s21, 1 }
 0x1b2   : > { %v405_v29 = vld [vmem:[%s1188_s3] sm:$0xff] (!%p617_p9)  ;;  %v406_v30 = vld [vmem:[%s1188_s3 + $0x8] sm:$0xff] (!%p617_p9)  ;;  %v407_v31 = vld [vmem:[%s1188_s3 + $0x10] sm:$0xff] (!%p617_p9)  ;;  %v923_v32 = vmov (!%p617_p9), 0.0|0.0   ;;  %vm924_vm7 = vmmov (!%p617_p9), 0   ;;  %v925_v35 = vmov (!%p617_p9), 0.0  }
 0x1b3   : > { %403 = sbr.rel (%p617_p9) target bundleno = 657 (0x291), region = 52  ;;  %656 = vmatprep.subr.bf16.mxu0 (!%p617_p9), %v923_v32  ;;  %v657_v33 = vpack.c.bf16 (!%p617_p9), %v406_v30, %v405_v29  ;;  %v408_v34 = vld [vmem:[%s1188_s3 + $0x18] sm:$0xff] (!%p617_p9)  ;;  %653 = vmatprep.mubr.msk.f32.mxu0 (!%p617_p9), %vm924_vm7, %v925_v35  ;;  %vm409_vm8 = vcmask (!%p617_p9), 261120  }
 0x1b4   : > { %v660_v36 = vpack.c.bf16 (!%p617_p9), %v408_v34, %v407_v31 }
 0x1b5   : > { %658 = vmatpush3.bf16.msra.mxu0 (!%p617_p9), %v657_v33 }
 0x1b6   : > { %659 = vmatprep.subr.bf16.mxu0 (!%p617_p9), %v923_v32  ;;  %v404_v37 = vld [vmem:[#allocation2] sm:$0xff] (!%p617_p9) }
 0x1b9   : > { %661 = vmatpush3.bf16.msra.mxu0 (!%p617_p9), %v660_v36 }
 0x1bc   : > { %654 = vmatmul.mubr.msk.f32.vlgmr.msra.gmra.mrb[0].mxu0 %vm409_vm8, %v404_v37 }
 0x28f   : > { %v479_v38 = vpop.f32.mrb[0].mxu0 }
 0x290   : > { %483 = vst [vmem:[%s269_s10] sm:$0xff] %v479_v38  ;;  %v655_v39 = vpop.f32.mrb[1].mxu0 }
 0x291 PF: > { %s620_s21 = sshll.u32 %s898_s22, 7  ;;  %s498_s12 = sshll.u32 %s269_s10, 4  ;;  %s499_s12 = int_to_ptr.vmem [resolvable:$true] %s498_s12 }
 0x292   : > { %s1125_s29 = scalar_lea.hbm %s1189_s4, %s620_s21  ;;  %s485_s23 = scalar_lea.sflag [#allocation5], %s267_s24 }
 0x293   : > { %s788_s26 = scalar_lea.vmem %s499_s12, 128  ;;  %s926_s30 = smov [#allocation6]  }
 0x294   : > { %p789_p10 = scmp.ne.s32.totalorder %s499_s12, %s788_s26  ;;  %s792_s13 = sshll.u32 %s926_s30, 4  ;;  %s793_s13 = int_to_ptr.vmem [resolvable:$false] %s792_s13 }
 0x295   : > { %s794_s8 = scalar_lea.vmem %s793_s13, 256  ;;  %p795_p0 = scmp.lt.s32.totalorder %s499_s12, %s793_s13 }
 0x296   : > { %p790_p11 = pnand %p789_p10, %p1034_p12  ;;  %p796_p2 = scmp.lt.s32.totalorder %s794_s8, %s788_s26 }
 0x298   : > { %p791_p13 = pneg %p790_p11  ;;  %p797_p4 = por %p796_p2, %p795_p0 }
 0x29a   : > { %p798_p5 = pnand %p797_p4, %p791_p13 }
 0x29c   : > { %801 = shalt.err (!%p798_p5)
}
 0x29d   : > { %s802_s22 = scalar_lea.hbm %s1125_s29, 128  ;;  %s806_s10 = scalar_lea.hbm %s1189_s4, 256 }
 0x29e   : > { %p803_p6 = scmp.ne.s32.totalorder %s1125_s29, %s802_s22  ;;  %p807_p8 = scmp.lt.u32.totalorder %s1125_s29, %s1189_s4 }
 0x29f   : > { %p808_p9 = scmp.lt.u32.totalorder %s806_s10, %s802_s22  ;;  %p810_p11 = scmp.lt.u32.totalorder %s802_s22, %s1125_s29 }
 0x2a0   : > { %p804_p3 = pnand %p803_p6, %p1034_p12 }
 0x2a1   : > { %p809_p10 = por %p808_p9, %p807_p8 }
 0x2a2   : > { %p805_p7 = pneg %p804_p3 }
 0x2a3   : > { %p811_p13 = por %p810_p11, %p809_p10 }
 0x2a5   : > { %p812_p0 = pnand %p811_p13, %p805_p7 }
 0x2a7   : > { %815 = shalt.err (!%p812_p0)
}
 0x2a8   : > { %671 = dma.vmem_to_hbm [thread:$0]  (%p1034_p12), %s499_s12, 128, %s1125_s29, %s485_s23  }
 0x2a9 PF: > { %p677_p2 = scmp.ge.s32.totalorder %s910_s25, 2  ;;  %s510_s5 = sand.u32 1, %s870_s15  }
 0x2aa   : > { %s511_s27 = scalar_lea.sflag [#allocation5], %s510_s5 }
 0x2ab   : > { %p674_p4 = pnand %p677_p2, %p1046_p1 }
 0x2ad   : > { %865 = dma.done.wait (!%p674_p4), %s511_s27, 128  }
 0x2ae   : > { %867 = vsyncadd (!%p674_p4), %s511_s27, 4294967168  ;;  %s20_s25 = sadd.s32 1, %s910_s25   ;;  %s1204_s21 = sld [smem:[#allocation16_spill]] }
 0x2af   : > { %p17_p5 = scmp.ge.s32.totalorder %s20_s25, 6   ;;  %s1205_s11 = sld [smem:[#allocation17_spill]] }
 0x2b0   : > { %s1206_s7 = sld [smem:[#allocation12_spill]]  ;;  %s1207_s22 = sld [smem:[#allocation13_spill]] }
 0x2b1   : > { %s1208_s23 = sld [smem:[#allocation14_spill]]  ;;  %s1209_s24 = sld [smem:[#allocation15_spill]] }
 0x2b2   : > { %s1210_s15 = smov %s874_s16  ;;  %s1211_s16 = smov %s878_s17 }
 0x2b3   : > { %s1213_s18 = smov %s886_s19  ;;  %s1214_s19 = smov %s890_s20 }
 0x2b4   : > { %s1212_s17 = smov %s1204_s21  ;;  %19 = sbr.rel (!%p17_p5) target bundleno = 9 (0x9), region = 101 }
 0x2b5   : > { %s1215_s20 = smov %s1205_s11 }
 0x2b6   : > { %s1216_s21 = smov %s1206_s7 }
 0x2bb   :  { %516 = vsyncpa [#allocation4], 1 }
 0x2bc   :  { %518 = vsyncpa [#allocation4 + $0x1], 1 }
 0x2bd   :  { %519 = vsyncpa [#allocation5], 1 }
 0x2be   :  { %521 = vsyncpa [#allocation5 + $0x1], 1 }

</bundles_post_ra>
